<compile_context>
chip_gen: v7x
topology: tpu7x:2x2x1
jax: 0.10.0
libtpu: 0.0.40
codegen_flags: <defaults>
</compile_context>

<pallas_src>
import functools

import jax
import jax.numpy as jnp
from jax import lax
from jax.experimental import pallas as pl
from jax.experimental.pallas import tpu as pltpu

# Padded-point coordinate: squared distance ~3e36 stays finite in f32 and is
# far larger than any real distance, so padded lanes are never selected.
_SENTINEL = 1e18


def _knn_stream_kernel(xyz_ref, center_ref, idx_ref, best_d_ref, best_i_ref,
                       *, group_size, n_tile):
    """Streaming K-NN index selection over N tiles.

    xyz_ref:    (1, 3, NT)  f32  lane-dense tile of points (channels-first)
    center_ref: (1, TG, 3)  f32  tile of group centers (NaN-cleaned in wrapper)
    idx_ref:    (1, TG, K)  i32  KNN indices, ascending distance (last step)
    best_d_ref: (TG, K)     f32  running best distances   (VMEM scratch)
    best_i_ref: (TG, K)     i32  running best global idxs  (VMEM scratch)
    """
    K = group_size
    n_step = pl.program_id(2)

    @pl.when(n_step == 0)
    def _():
        best_d_ref[...] = jnp.full_like(best_d_ref, jnp.inf)
        best_i_ref[...] = jnp.zeros_like(best_i_ref)

    x = xyz_ref[0]        # (3, NT)
    c = center_ref[0]     # (TG, 3)
    tg = c.shape[0]

    # Pure-VPU pairwise squared distances for this lane tile -> (TG, NT).
    d0 = c[:, 0:1] - x[0:1, :]
    d1 = c[:, 1:2] - x[1:2, :]
    d2 = c[:, 2:3] - x[2:3, :]
    dist = d0 * d0 + d1 * d1 + d2 * d2

    base = n_step * n_tile
    col_n = lax.broadcasted_iota(jnp.int32, (1, n_tile), 1)   # row iota only
    col_k = lax.broadcasted_iota(jnp.int32, (1, K), 1)

    bd0 = best_d_ref[...]          # working copy, consumed during the merge
    bi = best_i_ref[...]           # read-only during the merge

    nb_d0 = jnp.full((tg, K), jnp.inf, jnp.float32)
    nb_i0 = jnp.zeros((tg, K), jnp.int32)

    def body(k, carry):
        dloc, bd, nb_d, nb_i = carry
        # Candidate from the running best (tiny (TG, K) reductions).
        vb = jnp.min(bd, axis=-1, keepdims=True)                              # (TG,1)
        jb = jnp.argmin(bd, axis=-1, keepdims=True).astype(jnp.int32)         # (TG,1)
        ib = jnp.sum(jnp.where(col_k == jb, bi, 0), axis=-1, keepdims=True)   # (TG,1)
        # Candidate from the current tile (register-resident (TG, NT)).
        vt = jnp.min(dloc, axis=-1, keepdims=True)                            # (TG,1)
        jt = jnp.argmin(dloc, axis=-1, keepdims=True).astype(jnp.int32)       # (TG,1)
        it = base + jt
        # Earlier tiles hold strictly smaller global indices, so tie -> best
        # wins, reproducing a flat lowest-index argmin tie-break.
        take_best = vb <= vt
        sel_v = jnp.where(take_best, vb, vt)
        sel_i = jnp.where(take_best, ib, it)
        # Place the selection into column k of the new best (no dynamic store).
        put = col_k == k
        nb_d = jnp.where(put, sel_v, nb_d)
        nb_i = jnp.where(put, sel_i, nb_i)
        # Consume the selected candidate (index-based masking, safe for ties).
        bd = jnp.where((col_k == jb) & take_best, jnp.inf, bd)
        dloc = jnp.where((col_n == jt) & jnp.logical_not(take_best),
                         jnp.inf, dloc)
        return dloc, bd, nb_d, nb_i

    _, _, nb_d, nb_i = lax.fori_loop(
        0, K, body, (dist, bd0, nb_d0, nb_i0), unroll=min(4, K))

    best_d_ref[...] = nb_d
    best_i_ref[...] = nb_i

    @pl.when(n_step == pl.num_programs(2) - 1)
    def _():
        idx_ref[0] = nb_i


def _round_up(x, m):
    return (x + m - 1) // m * m


def _pick_tiles(batch, num_group, num_points):
    """Choose (center tile TG, lane tile NT, padded N)."""
    nt = min(512, _round_up(max(num_points, 1), 128))
    n_pad = _round_up(max(num_points, 1), nt)
    if num_group % 8 != 0:
        tg = num_group                       # full-dim block is always legal
    else:
        # Keep the per-tile (TG, NT) f32 distance slab ~<= 32 KiB so it stays
        # in vregs during the K-selection loop (zero VMEM traffic).
        cap = max(8, (32 * 1024) // (4 * nt))
        tg = 8
        while tg * 2 <= cap and num_group % (tg * 2) == 0:
            tg *= 2
        # Keep >= 2 steps on the parallel g axis when batch == 1 so both v7x
        # TensorCores get work.
        while batch == 1 and tg > 8 and num_group // tg < 2:
            tg //= 2
    return tg, nt, n_pad


def group_forward(xyz, sample_idx, group_size):
    """JAX/Pallas equivalent of Group.forward(xyz, sample_idx)."""
    xyz = jnp.asarray(xyz, jnp.float32)
    B, N, _ = xyz.shape
    sample_idx = jnp.asarray(sample_idx, jnp.int32).reshape(-1)
    G = int(sample_idx.shape[0])
    K = int(group_size)

    # --- glue: center gather + NaN handling (gather_operation + where) ---
    center_idx = sample_idx.reshape(1, G)                         # (1, G) int32
    center = jnp.take(xyz, center_idx[0], axis=1)                 # (B, G, 3)
    center = jnp.where(jnp.isnan(center), 0.0, center)

    tg, nt, n_pad = _pick_tiles(B, G, N)

    # Pad N to a multiple of the 128-lane tile with large finite sentinel
    # coordinates (padded lanes can never win an argmin), then go
    # channels-first so the big array is lane-dense in VMEM.
    # TODO(synk): NaN coordinates inside xyz itself are left untouched (the
    # reference only cleans the centers); KNN ordering over NaN distances is
    # undefined in both implementations.
    if n_pad != N:
        xyz_p = jnp.pad(xyz, ((0, 0), (0, n_pad - N), (0, 0)),
                        constant_values=_SENTINEL)
    else:
        xyz_p = xyz
    xyz_t = jnp.transpose(xyz_p, (0, 2, 1))                       # (B, 3, NP)

    kernel = functools.partial(_knn_stream_kernel, group_size=K, n_tile=nt)

    cost = pl.CostEstimate(
        flops=int(B * G * n_pad * (8 + 3 * K)),
        transcendentals=0,
        bytes_accessed=int(4 * B * ((G // tg) * 3 * n_pad + 3 * G + 2 * G * K)),
    )

    ori_idx = pl.pallas_call(
        kernel,
        out_shape=jax.ShapeDtypeStruct((B, G, K), jnp.int32),
        grid_spec=pltpu.PrefetchScalarGridSpec(
            num_scalar_prefetch=0,
            grid=(B, G // tg, n_pad // nt),
            in_specs=[
                pl.BlockSpec((1, 3, nt), lambda b, g, n: (b, 0, n)),
                pl.BlockSpec((1, tg, 3), lambda b, g, n: (b, g, 0)),
            ],
            out_specs=pl.BlockSpec((1, tg, K), lambda b, g, n: (b, g, 0)),
            scratch_shapes=[
                pltpu.VMEM((tg, K), jnp.float32),   # running best distances
                pltpu.VMEM((tg, K), jnp.int32),     # running best indices
            ],
        ),
        compiler_params=pltpu.CompilerParams(
            dimension_semantics=("parallel", "parallel", "arbitrary"),
            vmem_limit_bytes=32 * 1024 * 1024),
        cost_estimate=cost,
    )(xyz_t, center)

    # --- glue: tiny gather of the selected points + center subtraction ---
    # (B*G*K*12 bytes; the chosen points are no longer VMEM-resident once the
    #  streaming pass finishes, so an in-kernel gather would need a 2nd pass.)
    flat_idx = ori_idx.reshape(B, G * K, 1)
    gathered = jnp.take_along_axis(xyz, flat_idx, axis=1)         # (B, G*K, 3)
    neighborhood = gathered.reshape(B, G, K, 3) - center[:, :, None, :]

    return neighborhood, center, ori_idx, center_idx


if __name__ == "__main__":
    B, N = 2, 64
    num_group, group_size = 8, 4

    key = jax.random.PRNGKey(0)
    xyz = jax.random.normal(key, (B, N, 3), dtype=jnp.float32)

    # deterministic FPS-like sample indices (one per group)
    sample_idx = jnp.arange(0, N, N // num_group, dtype=jnp.int32)[:num_group]

    neighborhood, center, ori_idx, center_idx = group_forward(
        xyz, sample_idx, group_size)
    jax.block_until_ready((neighborhood, center, ori_idx, center_idx))

    assert neighborhood.shape == (B, num_group, group_size, 3)
    assert center.shape == (B, num_group, 3)
    assert ori_idx.shape == (B, num_group, group_size)
    assert center_idx.shape == (1, num_group)

    # light correctness check: distances of the selected neighbors must equal
    # the K smallest distances per center (robust to index tie ordering)
    d_ref = jnp.sum((center[:, :, None, :] - xyz[:, None, :, :]) ** 2, axis=-1)
    d_sel = jnp.take_along_axis(d_ref, ori_idx, axis=-1)          # (B, G, K)
    d_top = -lax.top_k(-d_ref, group_size)[0]                     # (B, G, K)
    assert bool(jnp.allclose(jnp.sort(d_sel, -1), jnp.sort(d_top, -1),
                             rtol=1e-5, atol=1e-5))
    # all selected indices must point at real (non-padded) points
    assert bool(jnp.all((ori_idx >= 0) & (ori_idx < N)))

    print("KERNEL_OK")
</pallas_src>

<mosaic_0001>
module attributes {stable_mosaic.version = 11 : i64} {
  func.func @_knn_stream_kernel(%arg0: i32, %arg1: i32, %arg2: i32, %arg3: memref<1x3x128xf32, #tpu.memory_space<vmem>>, %arg4: memref<1x8x3xf32, #tpu.memory_space<vmem>>, %arg5: memref<1x8x4xi32, #tpu.memory_space<vmem>>, %arg6: memref<8x4xf32, #tpu.memory_space<vmem>>, %arg7: memref<8x4xi32, #tpu.memory_space<vmem>>) attributes {dimension_semantics = [#tpu.dimension_semantics<parallel>, #tpu.dimension_semantics<parallel>, #tpu.dimension_semantics<arbitrary>], iteration_bounds = array<i64: 2, 1, 1>, scalar_prefetch = 0 : i64, scratch_operands = 2 : i64, tpu.core_type = #tpu.core_type<tc>, window_params = [{transform_indices = @transform_0, window_bounds = array<i64: 1, 3, 128>}, {transform_indices = @transform_1, window_bounds = array<i64: 1, 8, 3>}, {transform_indices = @transform_2, window_bounds = array<i64: 1, 8, 4>}]} {
    %c0_i32 = arith.constant 0 : i32
    %0 = arith.cmpi eq, %arg2, %c0_i32 : i32
    %1 = arith.extui %0 : i1 to i32
    %c0_i32_0 = arith.constant 0 : i32
    %2 = arith.cmpi ne, %1, %c0_i32_0 : i32
    scf.if %2 {
      %cst_46 = arith.constant 0x7F800000 : f32
      %227 = vector.broadcast %cst_46 : f32 to vector<8x4xf32>
      %c0_47 = arith.constant 0 : index
      %c0_48 = arith.constant 0 : index
      %228 = vector.load %arg6[%c0_47, %c0_48] : memref<8x4xf32, #tpu.memory_space<vmem>>, vector<8x4xf32>
      tpu.vector_store %arg6[%c0_47, %c0_48], %227 {strides = array<i32>} : memref<8x4xf32, #tpu.memory_space<vmem>>, vector<8x4xf32>,
      %c0_i32_49 = arith.constant 0 : i32
      %229 = vector.broadcast %c0_i32_49 : i32 to vector<8x4xi32>
      %c0_50 = arith.constant 0 : index
      %c0_51 = arith.constant 0 : index
      %230 = vector.load %arg7[%c0_50, %c0_51] : memref<8x4xi32, #tpu.memory_space<vmem>>, vector<8x4xi32>
      tpu.vector_store %arg7[%c0_50, %c0_51], %229 {strides = array<i32>} : memref<8x4xi32, #tpu.memory_space<vmem>>, vector<8x4xi32>,
    } else {
    }
    %c0 = arith.constant 0 : index
    %c0_1 = arith.constant 0 : index
    %c0_2 = arith.constant 0 : index
    %3 = vector.load %arg3[%c0, %c0_1, %c0_2] : memref<1x3x128xf32, #tpu.memory_space<vmem>>, vector<1x3x128xf32>
    %4 = vector.shape_cast %3 : vector<1x3x128xf32> to vector<3x128xf32>
    %c0_3 = arith.constant 0 : index
    %c0_4 = arith.constant 0 : index
    %c0_5 = arith.constant 0 : index
    %5 = vector.load %arg4[%c0_3, %c0_4, %c0_5] : memref<1x8x3xf32, #tpu.memory_space<vmem>>, vector<1x8x3xf32>
    %6 = vector.shape_cast %5 : vector<1x8x3xf32> to vector<8x3xf32>
    %7 = vector.extract_strided_slice %6 {offsets = [0, 0], sizes = [8, 1], strides = [1, 1]} : vector<8x3xf32> to vector<8x1xf32>
    %8 = vector.extract_strided_slice %4 {offsets = [0, 0], sizes = [1, 128], strides = [1, 1]} : vector<3x128xf32> to vector<1x128xf32>
    %9 = vector.broadcast %7 : vector<8x1xf32> to vector<8x128xf32>
    %10 = vector.broadcast %8 : vector<1x128xf32> to vector<8x128xf32>
    %11 = arith.subf %9, %10 : vector<8x128xf32>
    %12 = vector.extract_strided_slice %6 {offsets = [0, 1], sizes = [8, 1], strides = [1, 1]} : vector<8x3xf32> to vector<8x1xf32>
    %13 = vector.extract_strided_slice %4 {offsets = [1, 0], sizes = [1, 128], strides = [1, 1]} : vector<3x128xf32> to vector<1x128xf32>
    %14 = vector.broadcast %12 : vector<8x1xf32> to vector<8x128xf32>
    %15 = vector.broadcast %13 : vector<1x128xf32> to vector<8x128xf32>
    %16 = arith.subf %14, %15 : vector<8x128xf32>
    %17 = vector.extract_strided_slice %6 {offsets = [0, 2], sizes = [8, 1], strides = [1, 1]} : vector<8x3xf32> to vector<8x1xf32>
    %18 = vector.extract_strided_slice %4 {offsets = [2, 0], sizes = [1, 128], strides = [1, 1]} : vector<3x128xf32> to vector<1x128xf32>
    %19 = vector.broadcast %17 : vector<8x1xf32> to vector<8x128xf32>
    %20 = vector.broadcast %18 : vector<1x128xf32> to vector<8x128xf32>
    %21 = arith.subf %19, %20 : vector<8x128xf32>
    %22 = arith.mulf %11, %11 : vector<8x128xf32>
    %23 = arith.mulf %16, %16 : vector<8x128xf32>
    %24 = arith.addf %22, %23 : vector<8x128xf32>
    %25 = arith.mulf %21, %21 : vector<8x128xf32>
    %26 = arith.addf %24, %25 : vector<8x128xf32>
    %c128_i32 = arith.constant 128 : i32
    %27 = arith.muli %arg2, %c128_i32 : i32
    %28 = tpu.iota {dimensions = array<i32: 1>} : vector<1x128xi32>
    %29 = tpu.iota {dimensions = array<i32: 1>} : vector<1x4xi32>
    %c0_6 = arith.constant 0 : index
    %c0_7 = arith.constant 0 : index
    %30 = vector.load %arg6[%c0_6, %c0_7] : memref<8x4xf32, #tpu.memory_space<vmem>>, vector<8x4xf32>
    %c0_8 = arith.constant 0 : index
    %c0_9 = arith.constant 0 : index
    %31 = vector.load %arg7[%c0_8, %c0_9] : memref<8x4xi32, #tpu.memory_space<vmem>>, vector<8x4xi32>
    %cst = arith.constant 0x7F800000 : f32
    %32 = vector.broadcast %cst : f32 to vector<8x4xf32>
    %c0_i32_10 = arith.constant 0 : i32
    %33 = vector.broadcast %c0_i32_10 : i32 to vector<8x4xi32>
    %c0_i32_11 = arith.constant 0 : i32
    %cst_12 = arith.constant dense<0x7F800000> : vector<8xf32>
    %34 = vector.multi_reduction <minimumf>, %30, %cst_12 [1] : vector<8x4xf32> to vector<8xf32>
    %35 = vector.shape_cast %34 : vector<8xf32> to vector<8x1xf32>
    %36 = tpu.reduce_index %30 {axis = 1 : i32, kind = #tpu.reduction_kind<arg_min>} : vector<8x4xf32> -> vector<8xi32>
    %37 = vector.shape_cast %36 : vector<8xi32> to vector<8x1xi32>
    %38 = vector.broadcast %29 : vector<1x4xi32> to vector<8x4xi32>
    %39 = vector.broadcast %37 : vector<8x1xi32> to vector<8x4xi32>
    %40 = arith.cmpi eq, %38, %39 : vector<8x4xi32>
    %c0_i32_13 = arith.constant 0 : i32
    %41 = vector.broadcast %c0_i32_13 : i32 to vector<8x4xi32>
    %42 = arith.select %40, %31, %41 : vector<8x4xi1>, vector<8x4xi32>
    %cst_14 = arith.constant dense<0> : vector<8xi32>
    %43 = vector.multi_reduction <add>, %42, %cst_14 [1] : vector<8x4xi32> to vector<8xi32>
    %44 = vector.shape_cast %43 : vector<8xi32> to vector<8x1xi32>
    %cst_15 = arith.constant dense<0x7F800000> : vector<8xf32>
    %45 = vector.multi_reduction <minimumf>, %26, %cst_15 [1] : vector<8x128xf32> to vector<8xf32>
    %46 = vector.shape_cast %45 : vector<8xf32> to vector<8x1xf32>
    %47 = tpu.reduce_index %26 {axis = 1 : i32, kind = #tpu.reduction_kind<arg_min>} : vector<8x128xf32> -> vector<8xi32>
    %48 = vector.shape_cast %47 : vector<8xi32> to vector<8x1xi32>
    %49 = vector.broadcast %27 : i32 to vector<8x1xi32>
    %50 = arith.addi %49, %48 : vector<8x1xi32>
    %51 = arith.cmpf ole, %35, %46 : vector<8x1xf32>
    %52 = arith.select %51, %35, %46 : vector<8x1xi1>, vector<8x1xf32>
    %53 = arith.select %51, %44, %50 : vector<8x1xi1>, vector<8x1xi32>
    %54 = vector.broadcast %c0_i32_11 : i32 to vector<1x4xi32>
    %55 = arith.cmpi eq, %29, %54 : vector<1x4xi32>
    %56 = vector.shape_cast %55 : vector<1x4xi1> to vector<1x4xi1>
    %57 = vector.broadcast %56 : vector<1x4xi1> to vector<8x4xi1>
    %58 = vector.shape_cast %52 : vector<8x1xf32> to vector<8x1xf32>
    %59 = vector.broadcast %58 : vector<8x1xf32> to vector<8x4xf32>
    %60 = arith.select %57, %59, %32 : vector<8x4xi1>, vector<8x4xf32>
    %61 = vector.shape_cast %55 : vector<1x4xi1> to vector<1x4xi1>
    %62 = vector.broadcast %61 : vector<1x4xi1> to vector<8x4xi1>
    %63 = vector.shape_cast %53 : vector<8x1xi32> to vector<8x1xi32>
    %64 = vector.broadcast %63 : vector<8x1xi32> to vector<8x4xi32>
    %65 = arith.select %62, %64, %33 : vector<8x4xi1>, vector<8x4xi32>
    %66 = vector.broadcast %29 : vector<1x4xi32> to vector<8x4xi32>
    %67 = vector.broadcast %37 : vector<8x1xi32> to vector<8x4xi32>
    %68 = arith.cmpi eq, %66, %67 : vector<8x4xi32>
    %69 = vector.broadcast %51 : vector<8x1xi1> to vector<8x4xi1>
    %70 = arith.andi %68, %69 : vector<8x4xi1>
    %cst_16 = arith.constant 0x7F800000 : f32
    %71 = vector.broadcast %cst_16 : f32 to vector<8x4xf32>
    %72 = arith.select %70, %71, %30 : vector<8x4xi1>, vector<8x4xf32>
    %73 = vector.broadcast %28 : vector<1x128xi32> to vector<8x128xi32>
    %74 = vector.broadcast %48 : vector<8x1xi32> to vector<8x128xi32>
    %75 = arith.cmpi eq, %73, %74 : vector<8x128xi32>
    %cst_17 = arith.constant dense<true> : vector<8x1xi1>
    %76 = arith.xori %51, %cst_17 : vector<8x1xi1>
    %77 = vector.broadcast %76 : vector<8x1xi1> to vector<8x128xi1>
    %78 = arith.andi %75, %77 : vector<8x128xi1>
    %cst_18 = arith.constant 0x7F800000 : f32
    %79 = vector.broadcast %cst_18 : f32 to vector<8x128xf32>
    %80 = arith.select %78, %79, %26 : vector<8x128xi1>, vector<8x128xf32>
    %c1_i32 = arith.constant 1 : i32
    %cst_19 = arith.constant dense<0x7F800000> : vector<8xf32>
    %81 = vector.multi_reduction <minimumf>, %72, %cst_19 [1] : vector<8x4xf32> to vector<8xf32>
    %82 = vector.shape_cast %81 : vector<8xf32> to vector<8x1xf32>
    %83 = tpu.reduce_index %72 {axis = 1 : i32, kind = #tpu.reduction_kind<arg_min>} : vector<8x4xf32> -> vector<8xi32>
    %84 = vector.shape_cast %83 : vector<8xi32> to vector<8x1xi32>
    %85 = vector.broadcast %29 : vector<1x4xi32> to vector<8x4xi32>
    %86 = vector.broadcast %84 : vector<8x1xi32> to vector<8x4xi32>
    %87 = arith.cmpi eq, %85, %86 : vector<8x4xi32>
    %c0_i32_20 = arith.constant 0 : i32
    %88 = vector.broadcast %c0_i32_20 : i32 to vector<8x4xi32>
    %89 = arith.select %87, %31, %88 : vector<8x4xi1>, vector<8x4xi32>
    %cst_21 = arith.constant dense<0> : vector<8xi32>
    %90 = vector.multi_reduction <add>, %89, %cst_21 [1] : vector<8x4xi32> to vector<8xi32>
    %91 = vector.shape_cast %90 : vector<8xi32> to vector<8x1xi32>
    %cst_22 = arith.constant dense<0x7F800000> : vector<8xf32>
    %92 = vector.multi_reduction <minimumf>, %80, %cst_22 [1] : vector<8x128xf32> to vector<8xf32>
    %93 = vector.shape_cast %92 : vector<8xf32> to vector<8x1xf32>
    %94 = tpu.reduce_index %80 {axis = 1 : i32, kind = #tpu.reduction_kind<arg_min>} : vector<8x128xf32> -> vector<8xi32>
    %95 = vector.shape_cast %94 : vector<8xi32> to vector<8x1xi32>
    %96 = vector.broadcast %27 : i32 to vector<8x1xi32>
    %97 = arith.addi %96, %95 : vector<8x1xi32>
    %98 = arith.cmpf ole, %82, %93 : vector<8x1xf32>
    %99 = arith.select %98, %82, %93 : vector<8x1xi1>, vector<8x1xf32>
    %100 = arith.select %98, %91, %97 : vector<8x1xi1>, vector<8x1xi32>
    %101 = vector.broadcast %c1_i32 : i32 to vector<1x4xi32>
    %102 = arith.cmpi eq, %29, %101 : vector<1x4xi32>
    %103 = vector.shape_cast %102 : vector<1x4xi1> to vector<1x4xi1>
    %104 = vector.broadcast %103 : vector<1x4xi1> to vector<8x4xi1>
    %105 = vector.shape_cast %99 : vector<8x1xf32> to vector<8x1xf32>
    %106 = vector.broadcast %105 : vector<8x1xf32> to vector<8x4xf32>
    %107 = arith.select %104, %106, %60 : vector<8x4xi1>, vector<8x4xf32>
    %108 = vector.shape_cast %102 : vector<1x4xi1> to vector<1x4xi1>
    %109 = vector.broadcast %108 : vector<1x4xi1> to vector<8x4xi1>
    %110 = vector.shape_cast %100 : vector<8x1xi32> to vector<8x1xi32>
    %111 = vector.broadcast %110 : vector<8x1xi32> to vector<8x4xi32>
    %112 = arith.select %109, %111, %65 : vector<8x4xi1>, vector<8x4xi32>
    %113 = vector.broadcast %29 : vector<1x4xi32> to vector<8x4xi32>
    %114 = vector.broadcast %84 : vector<8x1xi32> to vector<8x4xi32>
    %115 = arith.cmpi eq, %113, %114 : vector<8x4xi32>
    %116 = vector.broadcast %98 : vector<8x1xi1> to vector<8x4xi1>
    %117 = arith.andi %115, %116 : vector<8x4xi1>
    %cst_23 = arith.constant 0x7F800000 : f32
    %118 = vector.broadcast %cst_23 : f32 to vector<8x4xf32>
    %119 = arith.select %117, %118, %72 : vector<8x4xi1>, vector<8x4xf32>
    %120 = vector.broadcast %28 : vector<1x128xi32> to vector<8x128xi32>
    %121 = vector.broadcast %95 : vector<8x1xi32> to vector<8x128xi32>
    %122 = arith.cmpi eq, %120, %121 : vector<8x128xi32>
    %cst_24 = arith.constant dense<true> : vector<8x1xi1>
    %123 = arith.xori %98, %cst_24 : vector<8x1xi1>
    %124 = vector.broadcast %123 : vector<8x1xi1> to vector<8x128xi1>
    %125 = arith.andi %122, %124 : vector<8x128xi1>
    %cst_25 = arith.constant 0x7F800000 : f32
    %126 = vector.broadcast %cst_25 : f32 to vector<8x128xf32>
    %127 = arith.select %125, %126, %80 : vector<8x128xi1>, vector<8x128xf32>
    %c2_i32 = arith.constant 2 : i32
    %cst_26 = arith.constant dense<0x7F800000> : vector<8xf32>
    %128 = vector.multi_reduction <minimumf>, %119, %cst_26 [1] : vector<8x4xf32> to vector<8xf32>
    %129 = vector.shape_cast %128 : vector<8xf32> to vector<8x1xf32>
    %130 = tpu.reduce_index %119 {axis = 1 : i32, kind = #tpu.reduction_kind<arg_min>} : vector<8x4xf32> -> vector<8xi32>
    %131 = vector.shape_cast %130 : vector<8xi32> to vector<8x1xi32>
    %132 = vector.broadcast %29 : vector<1x4xi32> to vector<8x4xi32>
    %133 = vector.broadcast %131 : vector<8x1xi32> to vector<8x4xi32>
    %134 = arith.cmpi eq, %132, %133 : vector<8x4xi32>
    %c0_i32_27 = arith.constant 0 : i32
    %135 = vector.broadcast %c0_i32_27 : i32 to vector<8x4xi32>
    %136 = arith.select %134, %31, %135 : vector<8x4xi1>, vector<8x4xi32>
    %cst_28 = arith.constant dense<0> : vector<8xi32>
    %137 = vector.multi_reduction <add>, %136, %cst_28 [1] : vector<8x4xi32> to vector<8xi32>
    %138 = vector.shape_cast %137 : vector<8xi32> to vector<8x1xi32>
    %cst_29 = arith.constant dense<0x7F800000> : vector<8xf32>
    %139 = vector.multi_reduction <minimumf>, %127, %cst_29 [1] : vector<8x128xf32> to vector<8xf32>
    %140 = vector.shape_cast %139 : vector<8xf32> to vector<8x1xf32>
    %141 = tpu.reduce_index %127 {axis = 1 : i32, kind = #tpu.reduction_kind<arg_min>} : vector<8x128xf32> -> vector<8xi32>
    %142 = vector.shape_cast %141 : vector<8xi32> to vector<8x1xi32>
    %143 = vector.broadcast %27 : i32 to vector<8x1xi32>
    %144 = arith.addi %143, %142 : vector<8x1xi32>
    %145 = arith.cmpf ole, %129, %140 : vector<8x1xf32>
    %146 = arith.select %145, %129, %140 : vector<8x1xi1>, vector<8x1xf32>
    %147 = arith.select %145, %138, %144 : vector<8x1xi1>, vector<8x1xi32>
    %148 = vector.broadcast %c2_i32 : i32 to vector<1x4xi32>
    %149 = arith.cmpi eq, %29, %148 : vector<1x4xi32>
    %150 = vector.shape_cast %149 : vector<1x4xi1> to vector<1x4xi1>
    %151 = vector.broadcast %150 : vector<1x4xi1> to vector<8x4xi1>
    %152 = vector.shape_cast %146 : vector<8x1xf32> to vector<8x1xf32>
    %153 = vector.broadcast %152 : vector<8x1xf32> to vector<8x4xf32>
    %154 = arith.select %151, %153, %107 : vector<8x4xi1>, vector<8x4xf32>
    %155 = vector.shape_cast %149 : vector<1x4xi1> to vector<1x4xi1>
    %156 = vector.broadcast %155 : vector<1x4xi1> to vector<8x4xi1>
    %157 = vector.shape_cast %147 : vector<8x1xi32> to vector<8x1xi32>
    %158 = vector.broadcast %157 : vector<8x1xi32> to vector<8x4xi32>
    %159 = arith.select %156, %158, %112 : vector<8x4xi1>, vector<8x4xi32>
    %160 = vector.broadcast %29 : vector<1x4xi32> to vector<8x4xi32>
    %161 = vector.broadcast %131 : vector<8x1xi32> to vector<8x4xi32>
    %162 = arith.cmpi eq, %160, %161 : vector<8x4xi32>
    %163 = vector.broadcast %145 : vector<8x1xi1> to vector<8x4xi1>
    %164 = arith.andi %162, %163 : vector<8x4xi1>
    %cst_30 = arith.constant 0x7F800000 : f32
    %165 = vector.broadcast %cst_30 : f32 to vector<8x4xf32>
    %166 = arith.select %164, %165, %119 : vector<8x4xi1>, vector<8x4xf32>
    %167 = vector.broadcast %28 : vector<1x128xi32> to vector<8x128xi32>
    %168 = vector.broadcast %142 : vector<8x1xi32> to vector<8x128xi32>
    %169 = arith.cmpi eq, %167, %168 : vector<8x128xi32>
    %cst_31 = arith.constant dense<true> : vector<8x1xi1>
    %170 = arith.xori %145, %cst_31 : vector<8x1xi1>
    %171 = vector.broadcast %170 : vector<8x1xi1> to vector<8x128xi1>
    %172 = arith.andi %169, %171 : vector<8x128xi1>
    %cst_32 = arith.constant 0x7F800000 : f32
    %173 = vector.broadcast %cst_32 : f32 to vector<8x128xf32>
    %174 = arith.select %172, %173, %127 : vector<8x128xi1>, vector<8x128xf32>
    %c3_i32 = arith.constant 3 : i32
    %cst_33 = arith.constant dense<0x7F800000> : vector<8xf32>
    %175 = vector.multi_reduction <minimumf>, %166, %cst_33 [1] : vector<8x4xf32> to vector<8xf32>
    %176 = vector.shape_cast %175 : vector<8xf32> to vector<8x1xf32>
    %177 = tpu.reduce_index %166 {axis = 1 : i32, kind = #tpu.reduction_kind<arg_min>} : vector<8x4xf32> -> vector<8xi32>
    %178 = vector.shape_cast %177 : vector<8xi32> to vector<8x1xi32>
    %179 = vector.broadcast %29 : vector<1x4xi32> to vector<8x4xi32>
    %180 = vector.broadcast %178 : vector<8x1xi32> to vector<8x4xi32>
    %181 = arith.cmpi eq, %179, %180 : vector<8x4xi32>
    %c0_i32_34 = arith.constant 0 : i32
    %182 = vector.broadcast %c0_i32_34 : i32 to vector<8x4xi32>
    %183 = arith.select %181, %31, %182 : vector<8x4xi1>, vector<8x4xi32>
    %cst_35 = arith.constant dense<0> : vector<8xi32>
    %184 = vector.multi_reduction <add>, %183, %cst_35 [1] : vector<8x4xi32> to vector<8xi32>
    %185 = vector.shape_cast %184 : vector<8xi32> to vector<8x1xi32>
    %cst_36 = arith.constant dense<0x7F800000> : vector<8xf32>
    %186 = vector.multi_reduction <minimumf>, %174, %cst_36 [1] : vector<8x128xf32> to vector<8xf32>
    %187 = vector.shape_cast %186 : vector<8xf32> to vector<8x1xf32>
    %188 = tpu.reduce_index %174 {axis = 1 : i32, kind = #tpu.reduction_kind<arg_min>} : vector<8x128xf32> -> vector<8xi32>
    %189 = vector.shape_cast %188 : vector<8xi32> to vector<8x1xi32>
    %190 = vector.broadcast %27 : i32 to vector<8x1xi32>
    %191 = arith.addi %190, %189 : vector<8x1xi32>
    %192 = arith.cmpf ole, %176, %187 : vector<8x1xf32>
    %193 = arith.select %192, %176, %187 : vector<8x1xi1>, vector<8x1xf32>
    %194 = arith.select %192, %185, %191 : vector<8x1xi1>, vector<8x1xi32>
    %195 = vector.broadcast %c3_i32 : i32 to vector<1x4xi32>
    %196 = arith.cmpi eq, %29, %195 : vector<1x4xi32>
    %197 = vector.shape_cast %196 : vector<1x4xi1> to vector<1x4xi1>
    %198 = vector.broadcast %197 : vector<1x4xi1> to vector<8x4xi1>
    %199 = vector.shape_cast %193 : vector<8x1xf32> to vector<8x1xf32>
    %200 = vector.broadcast %199 : vector<8x1xf32> to vector<8x4xf32>
    %201 = arith.select %198, %200, %154 : vector<8x4xi1>, vector<8x4xf32>
    %202 = vector.shape_cast %196 : vector<1x4xi1> to vector<1x4xi1>
    %203 = vector.broadcast %202 : vector<1x4xi1> to vector<8x4xi1>
    %204 = vector.shape_cast %194 : vector<8x1xi32> to vector<8x1xi32>
    %205 = vector.broadcast %204 : vector<8x1xi32> to vector<8x4xi32>
    %206 = arith.select %203, %205, %159 : vector<8x4xi1>, vector<8x4xi32>
    %207 = vector.broadcast %29 : vector<1x4xi32> to vector<8x4xi32>
    %208 = vector.broadcast %178 : vector<8x1xi32> to vector<8x4xi32>
    %209 = arith.cmpi eq, %207, %208 : vector<8x4xi32>
    %210 = vector.broadcast %192 : vector<8x1xi1> to vector<8x4xi1>
    %211 = arith.andi %209, %210 : vector<8x4xi1>
    %cst_37 = arith.constant 0x7F800000 : f32
    %212 = vector.broadcast %cst_37 : f32 to vector<8x4xf32>
    %213 = arith.select %211, %212, %166 : vector<8x4xi1>, vector<8x4xf32>
    %214 = vector.broadcast %28 : vector<1x128xi32> to vector<8x128xi32>
    %215 = vector.broadcast %189 : vector<8x1xi32> to vector<8x128xi32>
    %216 = arith.cmpi eq, %214, %215 : vector<8x128xi32>
    %cst_38 = arith.constant dense<true> : vector<8x1xi1>
    %217 = arith.xori %192, %cst_38 : vector<8x1xi1>
    %218 = vector.broadcast %217 : vector<8x1xi1> to vector<8x128xi1>
    %219 = arith.andi %216, %218 : vector<8x128xi1>
    %cst_39 = arith.constant 0x7F800000 : f32
    %220 = vector.broadcast %cst_39 : f32 to vector<8x128xf32>
    %221 = arith.select %219, %220, %174 : vector<8x128xi1>, vector<8x128xf32>
    %c4_i32 = arith.constant 4 : i32
    %c0_40 = arith.constant 0 : index
    %c0_41 = arith.constant 0 : index
    %222 = vector.load %arg6[%c0_40, %c0_41] : memref<8x4xf32, #tpu.memory_space<vmem>>, vector<8x4xf32>
    tpu.vector_store %arg6[%c0_40, %c0_41], %201 {strides = array<i32>} : memref<8x4xf32, #tpu.memory_space<vmem>>, vector<8x4xf32>,
    %c0_42 = arith.constant 0 : index
    %c0_43 = arith.constant 0 : index
    %223 = vector.load %arg7[%c0_42, %c0_43] : memref<8x4xi32, #tpu.memory_space<vmem>>, vector<8x4xi32>
    tpu.vector_store %arg7[%c0_42, %c0_43], %206 {strides = array<i32>} : memref<8x4xi32, #tpu.memory_space<vmem>>, vector<8x4xi32>,
    %c0_i32_44 = arith.constant 0 : i32
    %224 = arith.cmpi eq, %arg2, %c0_i32_44 : i32
    %225 = arith.extui %224 : i1 to i32
    %c0_i32_45 = arith.constant 0 : i32
    %226 = arith.cmpi ne, %225, %c0_i32_45 : i32
    scf.if %226 {
      %c0_46 = arith.constant 0 : index
      %c0_47 = arith.constant 0 : index
      %c0_48 = arith.constant 0 : index
      %227 = vector.load %arg5[%c0_46, %c0_47, %c0_48] : memref<1x8x4xi32, #tpu.memory_space<vmem>>, vector<1x8x4xi32>
      %228 = vector.shape_cast %227 : vector<1x8x4xi32> to vector<8x4xi32>
      %229 = vector.shape_cast %206 : vector<8x4xi32> to vector<1x8x4xi32>
      tpu.vector_store %arg5[%c0_46, %c0_47, %c0_48], %229 {strides = array<i32>} : memref<1x8x4xi32, #tpu.memory_space<vmem>>, vector<1x8x4xi32>,
    } else {
    }
    return
  }
  func.func @transform_0(%arg0: i32, %arg1: i32, %arg2: i32) -> (i32, i32, i32) {
    %c0_i32 = arith.constant 0 : i32
    %c0_i32_0 = arith.constant 0 : i32
    return %arg0, %c0_i32, %arg2 : i32, i32, i32
  }
  func.func @transform_1(%arg0: i32, %arg1: i32, %arg2: i32) -> (i32, i32, i32) {
    %c0_i32 = arith.constant 0 : i32
    %c0_i32_0 = arith.constant 0 : i32
    return %arg0, %arg1, %c0_i32 : i32, i32, i32
  }
  func.func @transform_2(%arg0: i32, %arg1: i32, %arg2: i32) -> (i32, i32, i32) {
    %c0_i32 = arith.constant 0 : i32
    %c0_i32_0 = arith.constant 0 : i32
    return %arg0, %arg1, %c0_i32 : i32, i32, i32
  }
}

</mosaic_0001>

<bundles_post_ra>
// kernel: tpu_custom_call.1
= control target key start
LH: loop header
LB: loop body
LE: loop exit
PB: predicated region body
PF: predicated region fallthrough
CT: control target
= control target key end

     0   :  { %s601_s9 = smov 0   ;;  %s603_s10 = smov 0   ;;  %s761_s0 = inlined_call_operand.vmem [shape: f32[2,3,128], index: 0, kind: input, shape index: {}]   ;;  %s762_s1 = inlined_call_operand.vmem [shape: f32[2,8,3], index: 1, kind: input, shape index: {}]   ;;  %s763_s2 = inlined_call_operand.vmem [shape: s32[2,8,4], index: 2, kind: output, shape index: {}]  }
   0x1   :  { %s605_s11 = smov 0  }
   0x2 LB: > { %s31_s12 = sadd.s32 1, %s575_s10  ;;  %p518_p0 = scmp.ge.s32.totalorder %s579_s11, 1  ;;  %s579_s11 = sphi %s605_s11, %s12_s11   ;;  %s575_s10 = sphi %s603_s10, %s765_s10   ;;  %s571_s9 = sphi %s601_s9, %s764_s9  }
   0x3   : > { %p33_p1 = scmp.ge.s32.totalorder %s31_s12, 2  ;;  %p151_p2 = scmp.lt.s32.totalorder %s579_s11, 3 }
   0x5   : > { %s767_s12 = smov (%p33_p1, %s31_s12), 0  ;;  %p152_p3 = pnand %p518_p0, %p151_p2 }
   0x6   : > { %vm209_vm0 = vcmask (!%p152_p3), 31744   ;;  %p184_p4 = scmp.lt.s32.totalorder (!%p152_p3), %s571_s9, 1  ;;  %v581_v0 = vmov (!%p152_p3), 0   ;;  %v582_v1 = vmov (!%p152_p3), 2   ;;  %v583_v3 = vmov (!%p152_p3), inf  }
   0x7   : > { %155 = sbr.rel (%p152_p3) target bundleno = 909 (0x38d), region = 28  ;;  %553 = vset.pattern.permute.xlu0 (!%p152_p3), %v581_v0  ;;  %211 = vst.msk [vmem:[#allocation3] sm:$0xff] (!%p152_p3), %vm209_vm0, %v581_v0  ;;  %555 = vset.pattern.permute.xlu1 (!%p152_p3), %v582_v1  ;;  %210 = vst.msk [vmem:[#allocation2] sm:$0xff] (!%p152_p3), %vm209_vm0, %v583_v3  ;;  %v584_v4 = vmov (!%p152_p3), 1   ;;  %v219_v7 = vlaneseq (!%p152_p3)  ;;  %vm585_vm5 = vmmov (!%p152_p3), 1  }
   0x9   : > { %v220_v8 = vshrl.u32 (!%p152_p3), %v219_v7, 7  ;;  %v636_v29 = vand.u32 (!%p152_p3), 127, %v219_v7 }
   0xb   : > { %v221_v9 = vsub.s32 (!%p152_p3), 0, %v220_v8  ;;  %v239_v10 = vsub.s32 (!%p152_p3), 2, %v220_v8  ;;  %v230_v12 = vsub.s32 (!%p152_p3), 1, %v220_v8  ;;  %vm282_vm8 = vcmp.eq.s32.totalorder (!%p152_p3), %v636_v29, 0 }
   0xc   : > { %vm325_vm9 = vcmp.eq.s32.totalorder (!%p152_p3), %v636_v29, 1 }
   0xe   : > { %s769_s9 = smov (!%p184_p4, %s571_s9), 1  ;;  %v250_v5 = vld [vmem:[#allocation2] sm:$0xff]  ;;  %v251_v44 = vld [vmem:[#allocation3] sm:$0xff] }
   0xf   : > { %s520_s13 = sshll.u32 %s769_s9, 3  ;;  %v253_v6 = vsel %vm209_vm0, %v250_v5, inf  ;;  %s519_s17 = sshll.u32 %s769_s9, 2 }
  0x10   : > { %s197_s16 = scalar_lea.vmem %s762_s1, %s520_s13  ;;  %s190_s20 = scalar_lea.vmem %s761_s0, %s519_s17 }
  0x11   : > { %v213_v2 = vld [vmem:[%s197_s16] sm:$0xff]  ;;  %s204_s23 = scalar_lea.vmem %s763_s2, %s520_s13 }
  0x12   : > { %216 = vperm.xlu0 %553, %v213_v2   ;;  %234 = vperm.xlu1 %555, %v213_v2   ;;  %v212_v11 = vld [vmem:[%s190_s20] sm:$0x7] }
  0x13   : > { %v222_v14 = vrot.slane %v212_v11, %v221_v9  ;;  %v240_v15 = vrot.slane %v212_v11, %v239_v10  ;;  %v231_v17 = vrot.slane %v212_v11, %v230_v12 }
  0x16   : > { %554 = vset.pattern.permute.xlu0 %v584_v4 }
  0x17   : > { %225 = vperm.xlu0 %554, %v213_v2  }
  0x1b   : > { %556 = vset.pattern.permute.xlu0 %v582_v1 }
  0x36   : > { %254 = vmin.xlane.f32.xlu1 %v253_v6  ;;  %256 = vmin.index.xlane.f32.xlu0 %v253_v6 }
  0x91   : > { %v217_v13 = vpop.permute.xlu0 %216  ;;  %v235_v16 = vpop.permute.xlu1 %234 }
  0x92   : > { %v223_v18 = vsub.f32 %v217_v13, %v222_v14  ;;  %v241_v19 = vsub.f32 %v235_v16, %v240_v15 }
  0x94   : > { %v242_v22 = vmul.f32 %v223_v18, %v223_v18  ;;  %v245_v24 = vmul.f32 %v241_v19, %v241_v19 }
  0x96   : > { %v226_v20 = vpop.permute.xlu0 %225 }
  0x97   : > { %v232_v21 = vsub.f32 %v226_v20, %v231_v17 }
  0x99   : > { %v243_v23 = vmul.f32 %v232_v21, %v232_v21 }
  0x9b   : > { %v244_v25 = vadd.f32 %v243_v23, %v242_v22 }
  0x9d   : > { %v246_v26 = vadd.f32 %v245_v24, %v244_v25 }
  0x9f   : > { %275 = vmin.index.xlane.f32.xlu0 %v246_v26  ;;  %273 = vmin.xlane.f32.xlu1 %v246_v26 }
  0xc3   : > { %v634_v27 = vpop.xlane.xlu1 %254  ;;  %v257_v28 = vpop.xlane.xlu0 %256 }
  0xc4   : > { %vm258_vm1 = vcmp.eq.s32.totalorder %v636_v29, %v257_v28 }
  0xc5   : > { %v259_v53 = vsel %vm258_vm1, %v251_v44, 0 }
  0xc6   : > { %v260_v56 = vsel %vm209_vm0, %v259_v53, 0 }
  0xc7   : > { %v262_v63 = vshrl.u32 %v260_v56, 16  ;;  %v261_v2 = vand.u32 65535, %v260_v56 }
  0xc9   : > { %v264_v1 = vcvt.s32.f32 %v262_v63  ;;  %v263_v3 = vcvt.s32.f32 %v261_v2 }
 0x12c   : > { %v639_v30 = vpop.xlane.xlu0 %275  ;;  %v641_v31 = vpop.xlane.xlu1 %273 }
 0x12d   : > { %vm279_vm2 = vcmp.le.f32.partialorder %v634_v27, %v641_v31  ;;  %vm291_vm3 = vcmp.eq.s32.totalorder %v636_v29, %v639_v30 }
 0x12e   : > { %vm289_vm4 = vmand %vm258_vm1, %vm279_vm2  ;;  %v280_v37 = vsel %vm279_vm2, %v634_v27, %v641_v31 }
 0x12f   : > { %v290_v32 = vsel %vm289_vm4, inf, %v250_v5  ;;  %vm292_vm6 = vmxor %vm279_vm2, %vm585_vm5  ;;  %v285_v40 = vsel %vm282_vm8, %v280_v37, inf  ;;  %vm368_vm4 = vcmp.eq.s32.totalorder %v636_v29, 2 }
 0x130   : > { %v297_v33 = vsel %vm209_vm0, %v290_v32, inf  ;;  %vm295_vm7 = vmand %vm291_vm3, %vm292_vm6 }
 0x131   : > { %300 = vmin.index.xlane.f32.xlu0 %v297_v33  ;;  %298 = vmin.xlane.f32.xlu1 %v297_v33  ;;  %v296_v34 = vsel %vm295_vm7, inf, %v246_v26 }
 0x135   : > { %319 = vmin.index.xlane.f32.xlu0 %v296_v34  ;;  %317 = vmin.xlane.f32.xlu1 %v296_v34 }
 0x1be   : > { %v301_v35 = vpop.xlane.xlu0 %300  ;;  %v657_v36 = vpop.xlane.xlu1 %298 }
 0x1bf   : > { %vm302_vm10 = vcmp.eq.s32.totalorder %v636_v29, %v301_v35 }
 0x1c0   : > { %v303_v46 = vsel %vm302_vm10, %v251_v44, 0 }
 0x1c1   : > { %v304_v47 = vsel %vm209_vm0, %v303_v46, 0 }
 0x1c2   : > { %v665_v38 = vpop.xlane.xlu0 %319  ;;  %v668_v39 = vpop.xlane.xlu1 %317  ;;  %v306_v49 = vshrl.u32 %v304_v47, 16  ;;  %v305_v4 = vand.u32 65535, %v304_v47 }
 0x1c3   : > { %vm322_vm11 = vcmp.le.f32.partialorder %v657_v36, %v668_v39  ;;  %vm334_vm12 = vcmp.eq.s32.totalorder %v636_v29, %v665_v38 }
 0x1c4   : > { %v323_v41 = vsel %vm322_vm11, %v657_v36, %v668_v39  ;;  %vm332_vm13 = vmand %vm302_vm10, %vm322_vm11  ;;  %v308_v50 = vcvt.s32.f32 %v306_v49  ;;  %v307_v5 = vcvt.s32.f32 %v305_v4 }
 0x1c5   : > { %v328_v42 = vsel %vm325_vm9, %v323_v41, %v285_v40  ;;  %v333_v43 = vsel %vm332_vm13, inf, %v290_v32  ;;  %vm335_vm14 = vmxor %vm322_vm11, %vm585_vm5 }
 0x1c6   : > { %v340_v45 = vsel %vm209_vm0, %v333_v43, inf  ;;  %vm338_vm15 = vmand %vm334_vm12, %vm335_vm14 }
 0x1c7   : > { %343 = vmin.index.xlane.f32.xlu0 %v340_v45  ;;  %341 = vmin.xlane.f32.xlu1 %v340_v45  ;;  %v339_v48 = vsel %vm338_vm15, inf, %v296_v34 }
 0x1cb   : > { %360 = vmin.xlane.f32.xlu1 %v339_v48 }
 0x1cf   : > { %362 = vmin.index.xlane.f32.xlu1 %v339_v48 }
 0x1d3   : > { %311 = vadd.xlane.f32.xlu1 %v308_v50 }
 0x254   : > { %v344_v51 = vpop.xlane.xlu0 %343  ;;  %v693_v52 = vpop.xlane.xlu1 %341 }
 0x255   : > { %vm345_vm3 = vcmp.eq.s32.totalorder %v636_v29, %v344_v51 }
 0x256   : > { %v346_v54 = vsel %vm345_vm3, %v251_v44, 0 }
 0x257   : > { %v347_v55 = vsel %vm209_vm0, %v346_v54, 0 }
 0x258   : > { %v701_v57 = vpop.xlane.xlu1 %360  ;;  %v349_v58 = vshrl.u32 %v347_v55, 16  ;;  %v348_v6 = vand.u32 65535, %v347_v55 }
 0x259   : > { %vm365_vm6 = vcmp.le.f32.partialorder %v693_v52, %v701_v57 }
 0x25a   : > { %v366_v59 = vsel %vm365_vm6, %v693_v52, %v701_v57  ;;  %v351_v60 = vcvt.s32.f32 %v349_v58  ;;  %vm375_vm1 = vmand %vm345_vm3, %vm365_vm6  ;;  %v350_v8 = vcvt.s32.f32 %v348_v6 }
 0x25b   : > { %v715_v61 = vsel %vm368_vm4, %v366_v59, %v328_v42  ;;  %v376_v62 = vsel %vm375_vm1, inf, %v333_v43  ;;  %vm378_vm10 = vmxor %vm365_vm6, %vm585_vm5  ;;  %vm411_vm5 = vcmp.eq.s32.totalorder %v636_v29, 3 }
 0x25c   : > { %354 = vadd.xlane.f32.xlu1 %v351_v60  ;;  %v383_v0 = vsel %vm209_vm0, %v376_v62, inf  ;;  %v363_v7 = vpop.xlane.xlu1 %362 }
 0x25d   : > { %386 = vmin.index.xlane.f32.xlu0 %v383_v0  ;;  %vm377_vm7 = vcmp.eq.s32.totalorder %v636_v29, %v363_v7 }
 0x25e   : > { %vm381_vm12 = vmand %vm377_vm7, %vm378_vm10 }
 0x25f   : > { %v382_v9 = vsel %vm381_vm12, inf, %v339_v48 }
 0x260   : > { %v312_v19 = vpop.xlane.xlu1 %311 }
 0x261   : > { %267 = vadd.xlane.f32.xlu0 %v264_v1  ;;  %v314_v23 = vcvt.f32.s32 %v312_v19 }
 0x263   : > { %v315_v34 = vshll.u32 %v314_v23, 16 }
 0x265   : > { %265 = vadd.xlane.f32.xlu0 %v263_v3 }
 0x269   : > { %309 = vadd.xlane.f32.xlu0 %v307_v5 }
 0x26d   : > { %352 = vadd.xlane.f32.xlu0 %v350_v8 }
 0x271   : > { %384 = vmin.xlane.f32.xlu0 %v383_v0 }
 0x275   : > { %405 = vmin.index.xlane.f32.xlu0 %v382_v9 }
 0x2e9   : > { %v355_v21 = vpop.xlane.xlu1 %354 }
 0x2ea   : > { %v387_v10 = vpop.xlane.xlu0 %386  ;;  %v357_v25 = vcvt.f32.s32 %v355_v21 }
 0x2eb   : > { %vm388_vm13 = vcmp.eq.s32.totalorder %v636_v29, %v387_v10 }
 0x2ec   : > { %v389_v11 = vsel %vm388_vm13, %v251_v44, 0  ;;  %v358_v37 = vshll.u32 %v357_v25, 16 }
 0x2ed   : > { %v390_v12 = vsel %vm209_vm0, %v389_v11, 0 }
 0x2ee   : > { %v392_v13 = vshrl.u32 %v390_v12, 16  ;;  %v391_v15 = vand.u32 65535, %v390_v12  ;;  %v268_v17 = vpop.xlane.xlu0 %267 }
 0x2ef   : > { %v270_v22 = vcvt.f32.s32 %v268_v17 }
 0x2f0   : > { %v394_v14 = vcvt.s32.f32 %v392_v13  ;;  %v393_v16 = vcvt.s32.f32 %v391_v15 }
 0x2f1   : > { %v271_v32 = vshll.u32 %v270_v22, 16 }
 0x2f2   : > { %397 = vadd.xlane.f32.xlu1 %v394_v14  ;;  %v266_v18 = vpop.xlane.xlu0 %265 }
 0x2f3   : > { %v269_v26 = vcvt.f32.s32 %v266_v18 }
 0x2f5   : > { %v272_v40 = vadd.s32 %v271_v32, %v269_v26 }
 0x2f6   : > { %395 = vadd.xlane.f32.xlu1 %v393_v16  ;;  %v310_v20 = vpop.xlane.xlu0 %309 }
 0x2f7   : > { %v313_v28 = vcvt.f32.s32 %v310_v20  ;;  %v281_v46 = vsel %vm279_vm2, %v272_v40, %v639_v30 }
 0x2f8   : > { %v286_v53 = vsel %vm282_vm8, %v281_v46, 0 }
 0x2f9   : > { %v316_v42 = vadd.s32 %v315_v34, %v313_v28 }
 0x2fa   : > { %403 = vmin.xlane.f32.xlu1 %v382_v9  ;;  %v353_v24 = vpop.xlane.xlu0 %352 }
 0x2fb   : > { %v356_v33 = vcvt.f32.s32 %v353_v24  ;;  %v324_v49 = vsel %vm322_vm11, %v316_v42, %v665_v38 }
 0x2fc   : > { %v329_v27 = vsel %vm325_vm9, %v324_v49, %v286_v53 }
 0x2fd   : > { %v359_v43 = vadd.s32 %v358_v37, %v356_v33 }
 0x2fe   : > { %v385_v44 = vpop.xlane.xlu0 %384 }
 0x2ff   : > { %v367_v50 = vsel %vm365_vm6, %v359_v43, %v363_v7 }
 0x300   : > { %v372_v31 = vsel %vm368_vm4, %v367_v50, %v329_v27 }
 0x302   : > { %v406_v30 = vpop.xlane.xlu0 %405 }
 0x37f   : > { %v398_v35 = vpop.xlane.xlu1 %397 }
 0x380   : > { %v400_v41 = vcvt.f32.s32 %v398_v35 }
 0x382   : > { %v401_v47 = vshll.u32 %v400_v41, 16 }
 0x383   : > { %v396_v45 = vpop.xlane.xlu1 %395 }
 0x384   : > { %v399_v48 = vcvt.f32.s32 %v396_v45 }
 0x386   : > { %v402_v51 = vadd.s32 %v401_v47, %v399_v48 }
 0x387   : > { %v404_v54 = vpop.xlane.xlu1 %403 }
 0x388   : > { %vm408_vm2 = vcmp.le.f32.partialorder %v385_v44, %v404_v54 }
 0x389   : > { %v409_v36 = vsel %vm408_vm2, %v385_v44, %v404_v54  ;;  %v410_v38 = vsel %vm408_vm2, %v402_v51, %v406_v30 }
 0x38a   : > { %v414_v39 = vsel %vm411_vm5, %v409_v36, %v715_v61  ;;  %v415_v52 = vsel %vm411_vm5, %v410_v38, %v372_v31 }
 0x38b   : > { %416 = vst.msk [vmem:[#allocation2] sm:$0xff] %vm209_vm0, %v414_v39  ;;  %417 = vst.msk [vmem:[#allocation3] sm:$0xff] %vm209_vm0, %v415_v52 }
 0x38c   : > { %421 = vst.msk [vmem:[%s204_s23] sm:$0xff] %vm209_vm0, %v415_v52 }
 0x38d PF: > { %s12_s11 = sadd.s32 1, %s579_s11   ;;  %s764_s9 = smov %s575_s10 }
 0x38e   : > { %p9_p5 = scmp.ge.s32.totalorder %s12_s11, 4   ;;  %s765_s10 = smov %s767_s12 }
 0x390   :  { %11 = sbr.rel (!%p9_p5) target bundleno = 2 (0x2), region = 69 }

</bundles_post_ra>
